<compile_context>
chip_gen: v7x
topology: tpu7x:2x2x1
jax: 0.10.0
libtpu: 0.0.40
codegen_flags: <defaults>
</compile_context>

<pallas_src>
import jax
import jax.numpy as jnp
from jax.experimental import pallas as pl
from jax.experimental.pallas import tpu as pltpu


def _fusion2_kernel(x_ref, y_ref, wx_ref, wy_ref, o_ref):
    # x_ref : (1, C,  TP)  pixels-on-lane tile of x
    # y_ref : (1, Cy, TP)  pixels-on-lane tile of the 2x2-pooled y
    # wx_ref: (C, C)       folded weight W2 @ W1
    # wy_ref: (C, Cy)      folded weight W2 @ Wd
    x = x_ref[0]                                                        # (C,  TP)
    y = y_ref[0]                                                        # (Cy, TP)
    acc = jnp.dot(wx_ref[...], x, preferred_element_type=jnp.float32)   # (C, TP)
    acc = acc + jnp.dot(wy_ref[...], y, preferred_element_type=jnp.float32)
    o_ref[0] = acc.astype(o_ref.dtype)


def _vmem_tile_cap(c_in, c_y, c_out, itemsize):
    """Largest lane-tile keeping double-buffered blocks well inside this chip's VMEM."""
    try:
        vmem_bytes = pltpu.get_tpu_info().vmem_capacity_bytes
    except Exception:
        vmem_bytes = 64 * 1024 * 1024          # v7x per-core VMEM (smallest generation)
    budget = vmem_bytes // 4                   # generous headroom (weights, pipeline)
    per_lane = 2 * (c_in + c_y + c_out) * itemsize   # double-buffered in + in + out
    cap = max(128, budget // per_lane)
    return (cap // 128) * 128


def _pick_tile_p(P, N, max_tile_p):
    """P is a multiple of 128.  Pick a lane-dense pixel tile that
       * keeps an even total grid-step count >= 4 (v7x: 2 TCs, >= 2 steps each),
       * prefers >= 4 steps along the pixel axis (pipeline overlap),
       * is as large as possible within max_tile_p (amortize ~0.35us/step overhead).
       Constraints are relaxed in order when P is too small to satisfy them."""
    divisors = [t for t in range(128, P + 1, 128) if P % t == 0 and t <= max_tile_p]
    if not divisors:
        divisors = [P]

    def feasible(t, need_pixel, need_total, need_even):
        steps = P // t
        total = N * steps
        return ((not need_pixel or steps >= 4)
                and (not need_total or total >= 4)
                and (not need_even or total % 2 == 0))

    for need in ((True, True, True), (False, True, True),
                 (False, True, False), (False, False, False)):
        ok = [t for t in divisors if feasible(t, *need)]
        if ok:
            return max(ok)
    return divisors[0]


def fusion2_pallas(x_nchw, y_nchw, w1, wd, w2, *, max_tile_p=2048):
    """x_nchw: (N, C, H, W); y_nchw: (N, Cy, 2H, 2W).
    w1, w2: (C, C, 1, 1) torch-style conv weights (out, in, 1, 1); wd: (C, Cy, 1, 1).
    Returns (N, C, H, W)."""
    N, C, H, W = x_nchw.shape
    Cy = y_nchw.shape[1]
    assert y_nchw.shape == (N, Cy, 2 * H, 2 * W)
    dtype = x_nchw.dtype
    itemsize = jnp.dtype(dtype).itemsize

    # --- glue: free reshapes only (no transposes / gathers) ----------------
    P = H * W
    x_cp = x_nchw.reshape(N, C, P)                                   # (N, C, P)

    # bilinear x0.5 (align_corners=False, even sizes) == 2x2 average pool.
    # Cheap reduce; allow_input_fusion below lets XLA fuse it into the operand.
    yp = y_nchw.reshape(N, Cy, H, 2, W, 2).mean(axis=(3, 5)).reshape(N, Cy, P)

    # --- pad pixels so the output store stays lane-dense (multiple of 128) --
    P_pad = ((P + 127) // 128) * 128
    if P_pad != P:
        pad = ((0, 0), (0, 0), (0, P_pad - P))
        x_cp = jnp.pad(x_cp, pad)
        yp = jnp.pad(yp, pad)

    # --- algebraic weight folding: res = (W2@W1) x + (W2@Wd) pool(y) --------
    # (runs under the caller's jit -> constant-folded when weights are static)
    w1_oi = w1[:, :, 0, 0].astype(jnp.float32)                       # (C, C)
    wd_oi = wd[:, :, 0, 0].astype(jnp.float32)                       # (C, Cy)
    w2_oi = w2[:, :, 0, 0].astype(jnp.float32)                       # (C, C)
    wx = jnp.dot(w2_oi, w1_oi)                                       # (C, C)
    wy = jnp.dot(w2_oi, wd_oi)                                       # (C, Cy)

    # --- tiling --------------------------------------------------------------
    tile_p = _pick_tile_p(P_pad, N,
                          min(max_tile_p, _vmem_tile_cap(C, Cy, C, itemsize)))
    grid = (N, P_pad // tile_p)

    # VMEM actually needed: double-buffered x/y/out blocks + weights + headroom.
    block_bytes = (C + Cy + C) * tile_p * itemsize
    w_bytes = (C * C + C * Cy) * 4
    vmem_limit = int(min(max(2 * block_bytes + w_bytes + (4 << 20), 16 << 20),
                         64 << 20))

    out_cp = pl.pallas_call(
        _fusion2_kernel,
        out_shape=jax.ShapeDtypeStruct((N, C, P_pad), dtype),
        grid=grid,
        in_specs=[
            pl.BlockSpec((1, C, tile_p), lambda n, p: (n, 0, p)),
            pl.BlockSpec((1, Cy, tile_p), lambda n, p: (n, 0, p)),
            pl.BlockSpec((C, C), lambda n, p: (0, 0)),
            pl.BlockSpec((C, Cy), lambda n, p: (0, 0)),
        ],
        out_specs=pl.BlockSpec((1, C, tile_p), lambda n, p: (n, 0, p)),
        compiler_params=pltpu.CompilerParams(
            dimension_semantics=("parallel", "parallel"),
            vmem_limit_bytes=vmem_limit,
            allow_input_fusion=[True, True, False, False],
        ),
    )(x_cp, yp, wx, wy)

    return out_cp[:, :, :P].reshape(N, C, H, W)


def _reference(x_nchw, y_nchw, w1, wd, w2):
    """Pure-jnp reference mirroring the PyTorch forward (no folding)."""
    N, C, H, W = x_nchw.shape
    Cy = y_nchw.shape[1]
    x1 = jnp.einsum("nchw,oc->nohw", x_nchw, w1[:, :, 0, 0])          # conv_1
    yp = y_nchw.reshape(N, Cy, H, 2, W, 2).mean(axis=(3, 5))          # bilinear x0.5
    down = jnp.einsum("nchw,oc->nohw", yp, wd[:, :, 0, 0])            # 1x1 conv
    s = x1 + down
    return jnp.einsum("nchw,oc->nohw", s, w2[:, :, 0, 0])             # conv_2


if __name__ == "__main__":
    # module hyper-params (bias=False): n_feat=32, scale_unetfeats=16
    n_feat, scale_unetfeats = 32, 16
    N, H, W = 2, 16, 16
    Cy = n_feat - scale_unetfeats

    key = jax.random.PRNGKey(0)
    kx, ky, k1, kd, k2 = jax.random.split(key, 5)
    x = jax.random.normal(kx, (N, n_feat, H, W), dtype=jnp.float32)
    y = jax.random.normal(ky, (N, Cy, 2 * H, 2 * W), dtype=jnp.float32)

    # deterministic synthetic conv weights, torch layout (out, in, 1, 1)
    w1 = 0.1 * jax.random.normal(k1, (n_feat, n_feat, 1, 1), dtype=jnp.float32)
    wd = 0.1 * jax.random.normal(kd, (n_feat, Cy, 1, 1), dtype=jnp.float32)
    w2 = 0.1 * jax.random.normal(k2, (n_feat, n_feat, 1, 1), dtype=jnp.float32)

    fused = jax.jit(lambda x, y, w1, wd, w2: fusion2_pallas(x, y, w1, wd, w2))
    out = jax.block_until_ready(fused(x, y, w1, wd, w2))

    ref = _reference(x, y, w1, wd, w2)
    assert out.shape == (N, n_feat, H, W)
    assert jnp.allclose(out, ref, atol=1e-4, rtol=1e-4), "mismatch vs reference"
    print("KERNEL_OK")
</pallas_src>

<mosaic_0001>
module attributes {stable_mosaic.version = 11 : i64} {
  func.func @_fusion2_kernel(%arg0: i32, %arg1: i32, %arg2: memref<1x32x128xf32, #tpu.memory_space<vmem>>, %arg3: memref<1x16x128xf32, #tpu.memory_space<vmem>>, %arg4: memref<32x32xf32, #tpu.memory_space<vmem>>, %arg5: memref<32x16xf32, #tpu.memory_space<vmem>>, %arg6: memref<1x32x128xf32, #tpu.memory_space<vmem>>) attributes {dimension_semantics = [#tpu.dimension_semantics<parallel>, #tpu.dimension_semantics<parallel>], iteration_bounds = array<i64: 2, 2>, scalar_prefetch = 0 : i64, scratch_operands = 0 : i64, tpu.core_type = #tpu.core_type<tc>, window_params = [{transform_indices = @transform_0, window_bounds = array<i64: 1, 32, 128>}, {transform_indices = @transform_1, window_bounds = array<i64: 1, 16, 128>}, {pipeline_mode = #tpu.pipeline_mode<synchronous>, transform_indices = @transform_2, window_bounds = array<i64: 32, 32>}, {pipeline_mode = #tpu.pipeline_mode<synchronous>, transform_indices = @transform_3, window_bounds = array<i64: 32, 16>}, {transform_indices = @transform_4, window_bounds = array<i64: 1, 32, 128>}]} {
    %c0 = arith.constant 0 : index
    %c0_0 = arith.constant 0 : index
    %c0_1 = arith.constant 0 : index
    %0 = vector.load %arg2[%c0, %c0_0, %c0_1] : memref<1x32x128xf32, #tpu.memory_space<vmem>>, vector<1x32x128xf32>
    %1 = vector.shape_cast %0 : vector<1x32x128xf32> to vector<32x128xf32>
    %c0_2 = arith.constant 0 : index
    %c0_3 = arith.constant 0 : index
    %c0_4 = arith.constant 0 : index
    %2 = vector.load %arg3[%c0_2, %c0_3, %c0_4] : memref<1x16x128xf32, #tpu.memory_space<vmem>>, vector<1x16x128xf32>
    %3 = vector.shape_cast %2 : vector<1x16x128xf32> to vector<16x128xf32>
    %c0_5 = arith.constant 0 : index
    %c0_6 = arith.constant 0 : index
    %4 = vector.load %arg4[%c0_5, %c0_6] : memref<32x32xf32, #tpu.memory_space<vmem>>, vector<32x32xf32>
    %cst = arith.constant dense<0.000000e+00> : vector<32x128xf32>
    %5 = tpu.matmul %4, %1, %cst {dimension_numbers = #tpu.dot_dimension_numbers<[1], [0], [0], [1], [0, 0, 1, 1], [], []>} : vector<32x32xf32>, vector<32x128xf32>, vector<32x128xf32> -> vector<32x128xf32>
    %c0_7 = arith.constant 0 : index
    %c0_8 = arith.constant 0 : index
    %6 = vector.load %arg5[%c0_7, %c0_8] : memref<32x16xf32, #tpu.memory_space<vmem>>, vector<32x16xf32>
    %cst_9 = arith.constant dense<0.000000e+00> : vector<32x128xf32>
    %7 = tpu.matmul %6, %3, %cst_9 {dimension_numbers = #tpu.dot_dimension_numbers<[1], [0], [0], [1], [0, 0, 1, 1], [], []>} : vector<32x16xf32>, vector<16x128xf32>, vector<32x128xf32> -> vector<32x128xf32>
    %8 = arith.addf %5, %7 : vector<32x128xf32>
    %c0_10 = arith.constant 0 : index
    %c0_11 = arith.constant 0 : index
    %c0_12 = arith.constant 0 : index
    %9 = vector.load %arg6[%c0_10, %c0_11, %c0_12] : memref<1x32x128xf32, #tpu.memory_space<vmem>>, vector<1x32x128xf32>
    %10 = vector.shape_cast %9 : vector<1x32x128xf32> to vector<32x128xf32>
    %11 = vector.shape_cast %8 : vector<32x128xf32> to vector<1x32x128xf32>
    tpu.vector_store %arg6[%c0_10, %c0_11, %c0_12], %11 {strides = array<i32>} : memref<1x32x128xf32, #tpu.memory_space<vmem>>, vector<1x32x128xf32>,
    return
  }
  func.func @transform_0(%arg0: i32, %arg1: i32) -> (i32, i32, i32) {
    %c0_i32 = arith.constant 0 : i32
    %c0_i32_0 = arith.constant 0 : i32
    return %arg0, %c0_i32, %arg1 : i32, i32, i32
  }
  func.func @transform_1(%arg0: i32, %arg1: i32) -> (i32, i32, i32) {
    %c0_i32 = arith.constant 0 : i32
    %c0_i32_0 = arith.constant 0 : i32
    return %arg0, %c0_i32, %arg1 : i32, i32, i32
  }
  func.func @transform_2(%arg0: i32, %arg1: i32) -> (i32, i32) {
    %c0_i32 = arith.constant 0 : i32
    %c0_i32_0 = arith.constant 0 : i32
    %c0_i32_1 = arith.constant 0 : i32
    return %c0_i32, %c0_i32_0 : i32, i32
  }
  func.func @transform_3(%arg0: i32, %arg1: i32) -> (i32, i32) {
    %c0_i32 = arith.constant 0 : i32
    %c0_i32_0 = arith.constant 0 : i32
    %c0_i32_1 = arith.constant 0 : i32
    return %c0_i32, %c0_i32_0 : i32, i32
  }
  func.func @transform_4(%arg0: i32, %arg1: i32) -> (i32, i32, i32) {
    %c0_i32 = arith.constant 0 : i32
    %c0_i32_0 = arith.constant 0 : i32
    return %arg0, %c0_i32, %arg1 : i32, i32, i32
  }
}

</mosaic_0001>

<bundles_post_ra>
// kernel: _lambda_.1
= control target key start
LH: loop header
LB: loop body
LE: loop exit
PB: predicated region body
PF: predicated region fallthrough
CT: control target
= control target key end

     0   :  { %s897_s15 = smov 0   ;;  %s899_s16 = smov 0   ;;  %s1043_s0 = inlined_call_operand.vmem [shape: f32[2,32,256], index: 0, kind: input, shape index: {}]   ;;  %s1044_s1 = inlined_call_operand.vmem [shape: f32[2,16,256], index: 1, kind: input, shape index: {}]   ;;  %s1045_s2 = inlined_call_operand.vmem [shape: f32[32,32], index: 2, kind: input, shape index: {}]   ;;  %s1046_s3 = inlined_call_operand.vmem [shape: f32[32,16], index: 3, kind: input, shape index: {}]   ;;  %s1047_s4 = inlined_call_operand.vmem [shape: f32[2,32,256], index: 4, kind: output, shape index: {}]  }
   0x1   :  { %s901_s17 = smov 0   ;;  %s903_s18 = smov 0  }
   0x2   :  { %s905_s19 = smov 0   ;;  %s907_s20 = smov 0  }
   0x3   :  { %s909_s21 = smov 0  }
   0x4 LB: > { %s23_s22 = sadd.s32 1, %s862_s19  ;;  %s26_s23 = sadd.s32 1, %s866_s20  ;;  %s870_s21 = sphi %s909_s21, %s14_s21   ;;  %s866_s20 = sphi %s907_s20, %s1055_s20   ;;  %s862_s19 = sphi %s905_s19, %s1054_s19   ;;  %s858_s18 = sphi %s903_s18, %s1053_s18   ;;  %s854_s17 = sphi %s901_s17, %s1052_s17   ;;  %s850_s16 = sphi %s899_s16, %s1051_s16   ;;  %s846_s15 = sphi %s897_s15, %s1050_s15  }
   0x5   : > { %p24_p0 = scmp.ge.s32.totalorder %s23_s22, 2  ;;  %s679_s24 = sadd.s32 4294967295, %s870_s21  }
   0x6   : > { %p42_p1 = scmp.ne.s32.totalorder %s850_s16, %s846_s15  ;;  %p43_p2 = scmp.eq.s32.totalorder %s870_s21, 0 }
   0x7   : > { %s1057_s22 = smov (%p24_p0, %s23_s22), 0  ;;  %s1059_s23 = smov (!%p24_p0, %s26_s23), %s866_s20 }
   0x8   : > { %p28_p3 = scmp.ge.s32.totalorder %s1059_s23, 2  ;;  %p144_p4 = scmp.eq.s32.totalorder %s679_s24, 3 }
   0x9   : > { %s31_s25 = ssub.s32 %s862_s19, %s1057_s22  ;;  %p943_p5 = por %p43_p2, %p42_p1 }
   0xa   : > { %s1061_s23 = smov (%p28_p3, %s1059_s23), 0  ;;  %p949_p6 = por %p144_p4, %p42_p1 }
   0xb   : > { %s30_s28 = ssub.s32 %s866_s20, %s1061_s23  ;;  %s35_s30 = sadd.s32 1, %s850_s16 }
   0xc   : > { %s32_s29 = sor.u32 %s31_s25, %s30_s28  ;;  %p682_p8 = scmp.ge.s32.totalorder %s870_s21, 4 }
   0xd   : > { %p33_p7 = scmp.eq.s32.totalorder %s32_s29, 0 }
   0xe   : > { %172 = sbr.rel (%p682_p8) target bundleno = 36 (0x24), region = 24 }
   0xf   : > { %s957_s5 = scalar_select %p33_p7, %s850_s16, %s35_s30  }
  0x15   : > { %175 = sbr.rel (!%p943_p5) target bundleno = 29 (0x1d), region = 28  ;;  %s177_s6 = sand.u32 (%p943_p5), 1, %s850_s16  }
  0x16   : > { %s684_s7 = sshll.u32 (%p943_p5), %s866_s20, 3  ;;  %s683_s8 = sshll.u32 (%p943_p5), %s177_s6, 5 }
  0x17   : > { %s181_s9 = sadd.s32 (%p943_p5), %s862_s19, %s684_s7  ;;  %s179_s14 = scalar_lea.vmem (%p943_p5), [#allocation2], %s683_s8 }
  0x18   : > { %s685_s10 = sshll.u32 (%p943_p5), %s181_s9, 3 }
  0x19   : > { %s183_s13 = scalar_lea.vmem (%p943_p5), %s1043_s0, %s685_s10 }
  0x1a   : > { %v217_v0 = vld [vmem:[%s183_s13] sm:$0xff] (%p943_p5)  ;;  %v219_v1 = vld [vmem:[%s183_s13 + $0x10] sm:$0xff] (%p943_p5) }
  0x1b   : > { %v221_v2 = vld [vmem:[%s183_s13 + $0x20] sm:$0xff] (%p943_p5)  ;;  %218 = vst [vmem:[%s179_s14] sm:$0xff] (%p943_p5), %v217_v0  ;;  %220 = vst [vmem:[%s179_s14 + $0x8] sm:$0xff] (%p943_p5), %v219_v1  ;;  %v223_v3 = vld [vmem:[%s183_s13 + $0x30] sm:$0xff] (%p943_p5) }
  0x1c   : > { %222 = vst [vmem:[%s179_s14 + $0x10] sm:$0xff] %v221_v2  ;;  %224 = vst [vmem:[%s179_s14 + $0x18] sm:$0xff] %v223_v3 }
  0x1d PF: > { %230 = sbr.rel (!%p943_p5) target bundleno = 36 (0x24), region = 66  ;;  %s232_s24 = sand.u32 (%p943_p5), 1, %s850_s16  }
  0x1e   : > { %s687_s25 = sshll.u32 (%p943_p5), %s866_s20, 2  ;;  %s686_s28 = sshll.u32 (%p943_p5), %s232_s24, 4 }
  0x1f   : > { %s236_s29 = sadd.s32 (%p943_p5), %s862_s19, %s687_s25  ;;  %s234_s9 = scalar_lea.vmem (%p943_p5), [#allocation3], %s686_s28 }
  0x20   : > { %s688_s30 = sshll.u32 (%p943_p5), %s236_s29, 3 }
  0x21   : > { %s238_s8 = scalar_lea.vmem (%p943_p5), %s1044_s1, %s688_s30 }
  0x22   : > { %v268_v4 = vld [vmem:[%s238_s8] sm:$0xff] (%p943_p5)  ;;  %v270_v5 = vld [vmem:[%s238_s8 + $0x10] sm:$0xff] (%p943_p5) }
  0x23   : > { %269 = vst [vmem:[%s234_s9] sm:$0xff] (%p943_p5), %v268_v4  ;;  %271 = vst [vmem:[%s234_s9 + $0x8] sm:$0xff] (%p943_p5), %v270_v5 }
  0x24 PF: > { %p689_p9 = scmp.ge.s32.totalorder %s870_s21, 1  ;;  %p276_p10 = scmp.lt.s32.totalorder %s870_s21, 5 }
  0x26   : > { %p277_p11 = pnand %p689_p9, %p276_p10 }
  0x27   : > { %s283_s26 = sand.u32 (!%p277_p11), 1, %s846_s15   ;;  %v328_v6 = vld [vmem:[%s1046_s3] sm:$0xff] (!%p277_p11)  ;;  %vm332_vm0 = vcmask (!%p277_p11), 130048   ;;  %vm430_vm1 = vcmask (!%p277_p11), 261120   ;;  %v329_v17 = vld [vmem:[%s1046_s3 + $0x8] sm:$0xff] (!%p277_p11)  ;;  %v330_v18 = vld [vmem:[%s1046_s3 + $0x10] sm:$0xff] (!%p277_p11) }
  0x28   : > { %280 = sbr.rel (%p277_p11) target bundleno = 281 (0x119), region = 104  ;;  %v324_v7 = vld [vmem:[%s1045_s2] sm:$0xff] (!%p277_p11)  ;;  %s985_s14 = sshll.u32 (!%p277_p11), %s283_s26, 5  ;;  %724 = vmatprep.mubr.msk.f32.mxu1 (!%p277_p11), %vm332_vm0, %v328_v6  ;;  %v325_v19 = vld [vmem:[%s1045_s2 + $0x8] sm:$0xff] (!%p277_p11)  ;;  %v331_v20 = vld [vmem:[%s1046_s3 + $0x18] sm:$0xff] (!%p277_p11) }
  0x29   : > { %s691_s24 = sshll.u32 (!%p277_p11), %s283_s26, 4  ;;  %738 = vmatprep.mubr.msk.f32.mxu0 (!%p277_p11), %vm430_vm1, %v324_v7  ;;  %s285_s25 = scalar_lea.vmem (!%p277_p11), [#allocation2], %s985_s14  ;;  %v326_v21 = vld [vmem:[%s1045_s2 + $0x10] sm:$0xff] (!%p277_p11)  ;;  %v327_v22 = vld [vmem:[%s1045_s2 + $0x18] sm:$0xff] (!%p277_p11) }
  0x2a   : > { %v318_v8 = vld [vmem:[%s285_s25] sm:$0xff] (!%p277_p11)  ;;  %v319_v9 = vld [vmem:[%s285_s25 + $0x8] sm:$0xff] (!%p277_p11)  ;;  %s292_s15 = scalar_lea.vmem (!%p277_p11), [#allocation3], %s691_s24  ;;  %v320_v13 = vld [vmem:[%s285_s25 + $0x10] sm:$0xff] (!%p277_p11)  ;;  %s317_s24 = scalar_lea.vmem (!%p277_p11), [#allocation4], %s985_s14 }
  0x2b   : > { %v322_v10 = vld [vmem:[%s292_s15] sm:$0xff] (!%p277_p11)  ;;  %v748_v11 = vpack.c.bf16 (!%p277_p11), %v319_v9, %v318_v8  ;;  %v323_v12 = vld [vmem:[%s292_s15 + $0x8] sm:$0xff] (!%p277_p11) }
  0x2c   : > { %v321_v14 = vld [vmem:[%s285_s25 + $0x18] sm:$0xff] (!%p277_p11)  ;;  %v744_v15 = vpack.c.bf16 (!%p277_p11), %v323_v12, %v322_v10 }
  0x2d   : > { %v752_v16 = vpack.c.bf16 (!%p277_p11), %v321_v14, %v320_v13  ;;  %749 = vmatprep.subr.bf16.mxu0 (!%p277_p11), %v748_v11 }
  0x2e   : > { %751 = vmatpush3.bf16.msra.mxu0 (!%p277_p11), %v748_v11  ;;  %745 = vmatprep.subr.bf16.mxu1 (!%p277_p11), %v744_v15 }
  0x2f   : > { %747 = vmatpush3.bf16.msra.mxu1 %v744_v15  ;;  %753 = vmatprep.subr.bf16.mxu0 %v752_v16  ;;  %s702_s25 = sshll.u32 (%p949_p6), %s858_s18, 3 }
  0x30   : > { %s540_s15 = sadd.s32 (%p949_p6), %s854_s17, %s702_s25 }
  0x31   : > { %s703_s14 = sshll.u32 (%p949_p6), %s540_s15, 3 }
  0x32   : > { %755 = vmatpush3.bf16.msra.mxu0 %v752_v16  ;;  %725 = vmatmul.mubr.msk.f32.vlgmr.msra.gmra.mrb[0].mxu1 %vm332_vm0, %v329_v17  ;;  %s542_s30 = scalar_lea.vmem (%p949_p6), %s1047_s4, %s703_s14 }
  0x33   : > { %727 = vmatprep.mubr.msk.f32.mxu1 %vm332_vm0, %v330_v18 }
  0x35   : > { %739 = vmatmul.mubr.msk.f32.vlgmr.msra.gmra.mrb[0].mxu0 %vm430_vm1, %v325_v19 }
  0x36   : > { %728 = vmatmul.mubr.msk.f32.gmra.mrb[2].mxu1 %vm332_vm0, %v331_v20  ;;  %741 = vmatprep.mubr.msk.f32.mxu0 %vm430_vm1, %v326_v21 }
  0x39   : > { %742 = vmatmul.mubr.msk.f32.gmra.mrb[2].mxu0 %vm430_vm1, %v327_v22 }
 0x105   : > { %v726_v23 = vpop.f32.mrb[0].mxu1 }
 0x106   : > { %v411_v24 = vpop.f32.mrb[1].mxu1 }
 0x108   : > { %v740_v25 = vpop.f32.mrb[0].mxu0 }
 0x109   : > { %v515_v26 = vadd.f32 %v740_v25, %v726_v23  ;;  %v509_v27 = vpop.f32.mrb[1].mxu0  ;;  %v729_v28 = vpop.f32.mrb[2].mxu1 }
 0x10a   : > { %v510_v29 = vadd.f32 %v509_v27, %v411_v24  ;;  %v421_v30 = vpop.f32.mrb[3].mxu1  ;;  %538 = sbr.rel (!%p949_p6) target bundleno = 281 (0x119), region = 116 }
 0x10b   : > { %529 = vst [vmem:[%s317_s24 + $0x8] sm:$0xff] %v515_v26 }
 0x10c   : > { %528 = vst [vmem:[%s317_s24] sm:$0xff] %v510_v29  ;;  %v743_v31 = vpop.f32.mrb[2].mxu0 }
 0x10d   : > { %v525_v32 = vadd.f32 %v743_v31, %v729_v28  ;;  %v519_v33 = vpop.f32.mrb[3].mxu0 }
 0x10e   : > { %v520_v34 = vadd.f32 %v519_v33, %v421_v30 }
 0x10f   : > { %531 = vst [vmem:[%s317_s24 + $0x18] sm:$0xff] %v525_v32 }
 0x110   : > { %530 = vst [vmem:[%s317_s24 + $0x10] sm:$0xff] %v520_v34 }
 0x112   : > { %v578_v36 = vld [vmem:[%s317_s24 + $0x8] sm:$0xff] }
 0x113   : > { %v576_v35 = vld [vmem:[%s317_s24] sm:$0xff]  ;;  %579 = vst [vmem:[%s542_s30 + $0x10] sm:$0xff] %v578_v36 }
 0x114   : > { %577 = vst [vmem:[%s542_s30] sm:$0xff] %v576_v35 }
 0x116   : > { %v582_v38 = vld [vmem:[%s317_s24 + $0x18] sm:$0xff] }
 0x117   : > { %v580_v37 = vld [vmem:[%s317_s24 + $0x10] sm:$0xff]  ;;  %583 = vst [vmem:[%s542_s30 + $0x30] sm:$0xff] %v582_v38 }
 0x118   : > { %581 = vst [vmem:[%s542_s30 + $0x20] sm:$0xff] %v580_v37 }
 0x119 PF: > { %s14_s21 = sadd.s32 1, %s870_s21   ;;  %s1050_s15 = smov %s850_s16 }
 0x11a   : > { %p11_p12 = scmp.ge.s32.totalorder %s14_s21, 6   ;;  %s1051_s16 = smov %s957_s5 }
 0x11b   : > { %s1052_s17 = smov %s862_s19  ;;  %s1053_s18 = smov %s866_s20 }
 0x11c   : > { %s1054_s19 = smov %s1057_s22  ;;  %s1055_s20 = smov %s1061_s23 }
 0x11d   :  { %13 = sbr.rel (!%p11_p12) target bundleno = 4 (0x4), region = 193 }

</bundles_post_ra>
